<compile_context>
chip_gen: v7x
topology: tpu7x:2x2x1
jax: 0.10.0
libtpu: 0.0.40
codegen_flags: <defaults>
</compile_context>

<pallas_src>
import functools

import jax
import jax.numpy as jnp
import numpy as np
from jax import lax
from jax.experimental import pallas as pl
from jax.experimental.pallas import tpu as pltpu

# Hidden-channel count above which the 1x1 convs go to the MXU instead of the
# unrolled VPU FMA loops (crossover is even lower on v5e's 4x128^2 MXU).
_MXU_MIN_HIDDEN = 64


def _inverted_residual_kernel(
    x_ref,    # (1, Cin, LW)   lane axis = NB images x flattened H*W (lane-dense)
    w1_ref,   # (Ch, Cin)      expand 1x1 weights (BN scale folded in)
    dw_ref,   # (Ch, k*k)      depthwise weights  (BN scale folded in)
    w2_ref,   # (Cout, Ch)     project 1x1 weights (BN scale folded in)
    b_ref,    # (Cb, 3)        packed BN biases: [:,0] expand, [:,1] dw, [:,2] project
    m_ref,    # (k*k, LW) f32  {0,1} tap masks (precomputed on host)
    o_ref,    # (1, Cout, LW)
    *,
    W: int,
    kernel_size: int,
    use_residual: bool,
    use_mxu: bool,
):
    Cin, LW = x_ref.shape[1], x_ref.shape[2]
    Ch = w1_ref.shape[0]
    Cout = w2_ref.shape[0]
    k = kernel_size
    p = k // 2

    x = x_ref[0].astype(jnp.float32)                          # (Cin, LW)

    # ---- expand: 1x1 conv (scale pre-folded) + bias + ReLU6 ----------------
    if use_mxu:
        e = jnp.dot(w1_ref[...], x, preferred_element_type=jnp.float32)
    else:
        # Tiny channel counts: unrolled VPU outer-product FMA beats a padded
        # MXU op.  Accumulator starts from the first term (no zeros + add).
        w1 = w1_ref[...]
        e = w1[:, 0:1] * x[0:1, :]
        for ci in range(1, Cin):
            e = e + w1[:, ci:ci + 1] * x[ci:ci + 1, :]
    e = jnp.clip(e + b_ref[:Ch, 0:1], 0.0, 6.0)                # (Ch, LW)

    # ---- depthwise kxk conv, stride 1, SAME zero padding -------------------
    # No materialized pad / strided-slice copies: each tap = lane rotation of
    # `e` (XLU) + precomputed {0,1} mask + FMA (VPU), with k independent
    # partial sums.  Masking `shifted` before the accumulate is what keeps the
    # wrap-around (across rows AND across images merged on the lane axis)
    # from leaking into the result.
    dwt = dw_ref[...]                                          # (Ch, k*k)
    masks = m_ref[...]                                         # (k*k, LW)
    row_accs = []
    for dy in range(k):
        oy = dy - p
        acc = None
        for dx in range(k):
            ox = dx - p
            off = oy * W + ox                                  # flattened offset
            t = dy * k + dx
            shifted = e if off == 0 else pltpu.roll(e, shift=(-off) % LW, axis=1)
            term = (shifted * masks[t:t + 1, :]) * dwt[:, t:t + 1]
            acc = term if acc is None else acc + term
        row_accs.append(acc)
    d = row_accs[0]
    for a in row_accs[1:]:
        d = d + a
    d = jnp.clip(d + b_ref[:Ch, 1:2], 0.0, 6.0)                # (Ch, LW)

    # ---- project: 1x1 conv (scale pre-folded) + bias -----------------------
    if use_mxu:
        out = jnp.dot(w2_ref[...], d, preferred_element_type=jnp.float32)
    else:
        w2 = w2_ref[...]
        out = w2[:, 0:1] * d[0:1, :]
        for ch in range(1, Ch):
            out = out + w2[:, ch:ch + 1] * d[ch:ch + 1, :]
    out = out + b_ref[:Cout, 2:3]

    if use_residual:
        out = out + x                                          # Cin == Cout here

    o_ref[0] = out.astype(o_ref.dtype)


def inverted_residual(x, params, *, kernel_size, stride, use_residual):
    """x: (N, Cin, H, W) float32, NCHW layout (same as the PyTorch module).

    params = (w1 (Cin,Ch), s1, b1, dw (k,k,Ch), s2, b2, w2 (Ch,Cout), s3, b3)
    where s*/b* are folded eval-mode BatchNorm scale/bias of shape (1, C).
    """
    N, Cin, H, W = x.shape
    w1, s1, b1, dw, s2, b2, w2, s3, b3 = params
    Ch = w1.shape[1]
    Cout = w2.shape[1]
    k = kernel_size
    if use_residual and (stride != 1 or Cin != Cout):
        raise ValueError("residual path requires stride == 1 and Cin == Cout")
    if stride != 1 and k % 2 == 0:
        # TODO(synk): even kernel_size with stride > 1 needs a dedicated strided
        # depthwise kernel; the subsample-of-stride-1 trick below matches the
        # PyTorch module only for odd kernel sizes.
        raise NotImplementedError("even kernel_size with stride > 1")

    HW = H * W

    # Merge NB batch images onto the lane axis: fewer, fatter grid steps
    # amortize the per-step fixed cost and keep the lane axis >= 512 wide.
    # TODO(synk): at real sizes keep G = N // nb >= 2 (or add an H-tiled grid
    # axis with a k//2 halo) so both v7x TensorCores get work, and size the
    # per-step working set against v7x's 64 MiB VMEM (vmem_limit_bytes).
    lane_target = 512
    lane_budget = 8192
    nb = 1
    for dcand in range(1, N + 1):
        if N % dcand == 0 and dcand * HW <= max(lane_budget, HW):
            nb = dcand
        if nb * HW >= lane_target:
            break
    LW = nb * HW
    G = N // nb

    # Fold BN scales into conv weights; transpose for the (C, lanes) layout.
    w1f = (w1.astype(jnp.float32) * s1.reshape(1, Ch)).T                   # (Ch, Cin)
    dwf = (dw.astype(jnp.float32) * s2.reshape(1, 1, Ch)).reshape(k * k, Ch).T  # (Ch, k*k)
    w2f = (w2.astype(jnp.float32) * s3.reshape(1, Cout)).T                 # (Cout, Ch)

    # Pack the remaining per-channel BN biases into one small array (one spec).
    Cb = max(Ch, Cout)
    bias = jnp.zeros((Cb, 3), jnp.float32)
    bias = bias.at[:Ch, 0].set(b1.reshape(Ch))
    bias = bias.at[:Ch, 1].set(b2.reshape(Ch))
    bias = bias.at[:Cout, 2].set(b3.reshape(Cout))

    # Precompute the {0,1} depthwise tap masks on the host: one row per tap,
    # tiled across the NB images merged on the lane axis.  This removes all
    # boundary compare/and arithmetic from the (VALU-bound) kernel.
    p = k // 2
    hh = np.repeat(np.arange(H, dtype=np.int32), W)
    ww = np.tile(np.arange(W, dtype=np.int32), H)
    masks_hw = np.zeros((k * k, HW), np.float32)
    for dy in range(k):
        for dx in range(k):
            oy, ox = dy - p, dx - p
            ok = (hh + oy >= 0) & (hh + oy < H) & (ww + ox >= 0) & (ww + ox < W)
            masks_hw[dy * k + dx] = ok.astype(np.float32)
    masks = jnp.asarray(np.tile(masks_hw, (1, nb)))                        # (k*k, LW)

    # (N, Cin, H, W) -> (G, Cin, NB*HW): NB images side by side on lanes.
    x_m = x.reshape(G, nb, Cin, HW).transpose(0, 2, 1, 3).reshape(G, Cin, LW)

    use_mxu = Ch >= _MXU_MIN_HIDDEN

    kern = functools.partial(
        _inverted_residual_kernel,
        W=W, kernel_size=k, use_residual=use_residual, use_mxu=use_mxu)

    def const(shape):
        zeros = (0,) * len(shape)
        return pl.BlockSpec(shape, lambda g, z=zeros: z)

    out_m = pl.pallas_call(
        kern,
        out_shape=jax.ShapeDtypeStruct((G, Cout, LW), jnp.float32),
        grid_spec=pltpu.PrefetchScalarGridSpec(
            num_scalar_prefetch=0,
            grid=(G,),
            in_specs=[
                pl.BlockSpec((1, Cin, LW), lambda g: (g, 0, 0)),
                const((Ch, Cin)),
                const((Ch, k * k)),
                const((Cout, Ch)),
                const((Cb, 3)),
                const((k * k, LW)),
            ],
            out_specs=pl.BlockSpec((1, Cout, LW), lambda g: (g, 0, 0)),
        ),
        compiler_params=pltpu.CompilerParams(
            dimension_semantics=("parallel",)),
    )(x_m, w1f, dwf, w2f, bias, masks)

    out = (out_m.reshape(G, Cout, nb, HW)
                .transpose(0, 2, 1, 3)
                .reshape(N, Cout, H, W))
    if stride != 1:
        # TODO(synk): run the project 1x1 and the output store only on the
        # subsampled positions inside the kernel (stride^2 less project FLOPs
        # and HBM writeback); for now compute the stride-1 SAME result and
        # subsample (correct for odd k).
        out = out[:, :, ::stride, ::stride]
    return out


def _bn_fold(gamma, beta, mean, var, eps=1e-5):
    scale = gamma / jnp.sqrt(var + eps)
    bias = beta - mean * scale
    return scale.reshape(1, -1), bias.reshape(1, -1)


def _reference(x, params, *, kernel_size, stride, use_residual):
    """Pure-JAX reference (lax.conv), NCHW, eval-mode BN as scale/bias."""
    w1, s1, b1, dw, s2, b2, w2, s3, b3 = params
    Ch = w1.shape[1]
    k, s, p = kernel_size, stride, kernel_size // 2
    dn = ("NCHW", "HWIO", "NCHW")
    cvec = lambda v: v.reshape(1, -1, 1, 1)

    e = lax.conv_general_dilated(x, w1.reshape(1, 1, *w1.shape), (1, 1),
                                 "VALID", dimension_numbers=dn)
    e = jnp.clip(e * cvec(s1) + cvec(b1), 0.0, 6.0)

    d = lax.conv_general_dilated(e, dw[:, :, None, :], (s, s),
                                 [(p, p), (p, p)], dimension_numbers=dn,
                                 feature_group_count=Ch)
    d = jnp.clip(d * cvec(s2) + cvec(b2), 0.0, 6.0)

    o = lax.conv_general_dilated(d, w2.reshape(1, 1, *w2.shape), (1, 1),
                                 "VALID", dimension_numbers=dn)
    o = o * cvec(s3) + cvec(b3)
    return x + o if use_residual else o


if __name__ == "__main__":
    # Module hyper-params (small, consistent with the PyTorch ctor).
    in_channels, out_channels = 4, 4
    kernel_size, stride, expansion_factor = 3, 1, 2
    hidden = int(in_channels * expansion_factor)
    use_residual = (in_channels == out_channels) and (stride == 1)

    N, H, W = 2, 16, 16
    key = jax.random.PRNGKey(0)
    keys = jax.random.split(key, 16)

    # Input in NCHW, exactly like the PyTorch module.
    x = jax.random.normal(keys[0], (N, in_channels, H, W), jnp.float32)

    w1 = jax.random.normal(keys[1], (in_channels, hidden), jnp.float32) * 0.3
    dw = jax.random.normal(keys[2], (kernel_size, kernel_size, hidden),
                           jnp.float32) * 0.3
    w2 = jax.random.normal(keys[3], (hidden, out_channels), jnp.float32) * 0.3

    def bn_params(k0, k1, k2, k3, c):
        gamma = jax.random.uniform(k0, (c,), jnp.float32, 0.5, 1.5)
        beta = jax.random.normal(k1, (c,), jnp.float32) * 0.1
        mean = jax.random.normal(k2, (c,), jnp.float32) * 0.1
        var = jax.random.uniform(k3, (c,), jnp.float32, 0.5, 1.5)
        return _bn_fold(gamma, beta, mean, var)

    s1, b1 = bn_params(keys[4], keys[5], keys[6], keys[7], hidden)
    s2, b2 = bn_params(keys[8], keys[9], keys[10], keys[11], hidden)
    s3, b3 = bn_params(keys[12], keys[13], keys[14], keys[15], out_channels)

    params = (w1, s1, b1, dw, s2, b2, w2, s3, b3)

    out = inverted_residual(x, params, kernel_size=kernel_size,
                            stride=stride, use_residual=use_residual)
    out = jax.block_until_ready(out)

    ref = _reference(x, params, kernel_size=kernel_size,
                     stride=stride, use_residual=use_residual)
    np.testing.assert_allclose(np.asarray(out), np.asarray(ref),
                               rtol=1e-5, atol=1e-4)
    print("KERNEL_OK")
</pallas_src>

<mosaic_0001>
module attributes {stable_mosaic.version = 11 : i64} {
  func.func @_inverted_residual_kernel(%arg0: i32, %arg1: memref<1x4x512xf32, #tpu.memory_space<vmem>>, %arg2: memref<8x4xf32, #tpu.memory_space<vmem>>, %arg3: memref<8x9xf32, #tpu.memory_space<vmem>>, %arg4: memref<4x8xf32, #tpu.memory_space<vmem>>, %arg5: memref<8x3xf32, #tpu.memory_space<vmem>>, %arg6: memref<9x512xf32, #tpu.memory_space<vmem>>, %arg7: memref<1x4x512xf32, #tpu.memory_space<vmem>>) attributes {dimension_semantics = [#tpu.dimension_semantics<parallel>], iteration_bounds = array<i64: 1>, scalar_prefetch = 0 : i64, scratch_operands = 0 : i64, tpu.core_type = #tpu.core_type<tc>, window_params = [{transform_indices = @transform_0, window_bounds = array<i64: 1, 4, 512>}, {pipeline_mode = #tpu.pipeline_mode<synchronous>, transform_indices = @transform_1, window_bounds = array<i64: 8, 4>}, {pipeline_mode = #tpu.pipeline_mode<synchronous>, transform_indices = @transform_2, window_bounds = array<i64: 8, 9>}, {pipeline_mode = #tpu.pipeline_mode<synchronous>, transform_indices = @transform_3, window_bounds = array<i64: 4, 8>}, {pipeline_mode = #tpu.pipeline_mode<synchronous>, transform_indices = @transform_4, window_bounds = array<i64: 8, 3>}, {pipeline_mode = #tpu.pipeline_mode<synchronous>, transform_indices = @transform_5, window_bounds = array<i64: 9, 512>}, {transform_indices = @transform_6, window_bounds = array<i64: 1, 4, 512>}]} {
    %c0 = arith.constant 0 : index
    %c0_0 = arith.constant 0 : index
    %c0_1 = arith.constant 0 : index
    %0 = vector.load %arg1[%c0, %c0_0, %c0_1] : memref<1x4x512xf32, #tpu.memory_space<vmem>>, vector<1x4x512xf32>
    %1 = vector.shape_cast %0 : vector<1x4x512xf32> to vector<4x512xf32>
    %c0_2 = arith.constant 0 : index
    %c0_3 = arith.constant 0 : index
    %2 = vector.load %arg2[%c0_2, %c0_3] : memref<8x4xf32, #tpu.memory_space<vmem>>, vector<8x4xf32>
    %3 = vector.extract_strided_slice %2 {offsets = [0, 0], sizes = [8, 1], strides = [1, 1]} : vector<8x4xf32> to vector<8x1xf32>
    %4 = vector.extract_strided_slice %1 {offsets = [0, 0], sizes = [1, 512], strides = [1, 1]} : vector<4x512xf32> to vector<1x512xf32>
    %5 = vector.broadcast %3 : vector<8x1xf32> to vector<8x512xf32>
    %6 = vector.broadcast %4 : vector<1x512xf32> to vector<8x512xf32>
    %7 = arith.mulf %5, %6 : vector<8x512xf32>
    %8 = vector.extract_strided_slice %2 {offsets = [0, 1], sizes = [8, 1], strides = [1, 1]} : vector<8x4xf32> to vector<8x1xf32>
    %9 = vector.extract_strided_slice %1 {offsets = [1, 0], sizes = [1, 512], strides = [1, 1]} : vector<4x512xf32> to vector<1x512xf32>
    %10 = vector.broadcast %8 : vector<8x1xf32> to vector<8x512xf32>
    %11 = vector.broadcast %9 : vector<1x512xf32> to vector<8x512xf32>
    %12 = arith.mulf %10, %11 : vector<8x512xf32>
    %13 = arith.addf %7, %12 : vector<8x512xf32>
    %14 = vector.extract_strided_slice %2 {offsets = [0, 2], sizes = [8, 1], strides = [1, 1]} : vector<8x4xf32> to vector<8x1xf32>
    %15 = vector.extract_strided_slice %1 {offsets = [2, 0], sizes = [1, 512], strides = [1, 1]} : vector<4x512xf32> to vector<1x512xf32>
    %16 = vector.broadcast %14 : vector<8x1xf32> to vector<8x512xf32>
    %17 = vector.broadcast %15 : vector<1x512xf32> to vector<8x512xf32>
    %18 = arith.mulf %16, %17 : vector<8x512xf32>
    %19 = arith.addf %13, %18 : vector<8x512xf32>
    %20 = vector.extract_strided_slice %2 {offsets = [0, 3], sizes = [8, 1], strides = [1, 1]} : vector<8x4xf32> to vector<8x1xf32>
    %21 = vector.extract_strided_slice %1 {offsets = [3, 0], sizes = [1, 512], strides = [1, 1]} : vector<4x512xf32> to vector<1x512xf32>
    %22 = vector.broadcast %20 : vector<8x1xf32> to vector<8x512xf32>
    %23 = vector.broadcast %21 : vector<1x512xf32> to vector<8x512xf32>
    %24 = arith.mulf %22, %23 : vector<8x512xf32>
    %25 = arith.addf %19, %24 : vector<8x512xf32>
    %c0_4 = arith.constant 0 : index
    %c0_5 = arith.constant 0 : index
    %26 = vector.load %arg5[%c0_4, %c0_5] : memref<8x3xf32, #tpu.memory_space<vmem>>, vector<8x1xf32>
    %27 = vector.broadcast %26 : vector<8x1xf32> to vector<8x512xf32>
    %28 = arith.addf %25, %27 : vector<8x512xf32>
    %cst = arith.constant 0.000000e+00 : f32
    %cst_6 = arith.constant 6.000000e+00 : f32
    %29 = vector.broadcast %cst : f32 to vector<8x512xf32>
    %30 = arith.maximumf %29, %28 : vector<8x512xf32>
    %31 = vector.broadcast %cst_6 : f32 to vector<8x512xf32>
    %32 = arith.minimumf %31, %30 : vector<8x512xf32>
    %c0_7 = arith.constant 0 : index
    %c0_8 = arith.constant 0 : index
    %33 = vector.load %arg3[%c0_7, %c0_8] : memref<8x9xf32, #tpu.memory_space<vmem>>, vector<8x9xf32>
    %c0_9 = arith.constant 0 : index
    %c0_10 = arith.constant 0 : index
    %34 = vector.load %arg6[%c0_9, %c0_10] : memref<9x512xf32, #tpu.memory_space<vmem>>, vector<9x512xf32>
    %c17_i32 = arith.constant 17 : i32
    %35 = tpu.dynamic_rotate %32 by %c17_i32 dim 1 : vector<8x512xf32>, i32 -> vector<8x512xf32>
    %36 = vector.extract_strided_slice %34 {offsets = [0, 0], sizes = [1, 512], strides = [1, 1]} : vector<9x512xf32> to vector<1x512xf32>
    %37 = vector.broadcast %36 : vector<1x512xf32> to vector<8x512xf32>
    %38 = arith.mulf %35, %37 : vector<8x512xf32>
    %39 = vector.extract_strided_slice %33 {offsets = [0, 0], sizes = [8, 1], strides = [1, 1]} : vector<8x9xf32> to vector<8x1xf32>
    %40 = vector.broadcast %39 : vector<8x1xf32> to vector<8x512xf32>
    %41 = arith.mulf %38, %40 : vector<8x512xf32>
    %c16_i32 = arith.constant 16 : i32
    %42 = tpu.dynamic_rotate %32 by %c16_i32 dim 1 : vector<8x512xf32>, i32 -> vector<8x512xf32>
    %43 = vector.extract_strided_slice %34 {offsets = [1, 0], sizes = [1, 512], strides = [1, 1]} : vector<9x512xf32> to vector<1x512xf32>
    %44 = vector.broadcast %43 : vector<1x512xf32> to vector<8x512xf32>
    %45 = arith.mulf %42, %44 : vector<8x512xf32>
    %46 = vector.extract_strided_slice %33 {offsets = [0, 1], sizes = [8, 1], strides = [1, 1]} : vector<8x9xf32> to vector<8x1xf32>
    %47 = vector.broadcast %46 : vector<8x1xf32> to vector<8x512xf32>
    %48 = arith.mulf %45, %47 : vector<8x512xf32>
    %49 = arith.addf %41, %48 : vector<8x512xf32>
    %c15_i32 = arith.constant 15 : i32
    %50 = tpu.dynamic_rotate %32 by %c15_i32 dim 1 : vector<8x512xf32>, i32 -> vector<8x512xf32>
    %51 = vector.extract_strided_slice %34 {offsets = [2, 0], sizes = [1, 512], strides = [1, 1]} : vector<9x512xf32> to vector<1x512xf32>
    %52 = vector.broadcast %51 : vector<1x512xf32> to vector<8x512xf32>
    %53 = arith.mulf %50, %52 : vector<8x512xf32>
    %54 = vector.extract_strided_slice %33 {offsets = [0, 2], sizes = [8, 1], strides = [1, 1]} : vector<8x9xf32> to vector<8x1xf32>
    %55 = vector.broadcast %54 : vector<8x1xf32> to vector<8x512xf32>
    %56 = arith.mulf %53, %55 : vector<8x512xf32>
    %57 = arith.addf %49, %56 : vector<8x512xf32>
    %c1_i32 = arith.constant 1 : i32
    %58 = tpu.dynamic_rotate %32 by %c1_i32 dim 1 : vector<8x512xf32>, i32 -> vector<8x512xf32>
    %59 = vector.extract_strided_slice %34 {offsets = [3, 0], sizes = [1, 512], strides = [1, 1]} : vector<9x512xf32> to vector<1x512xf32>
    %60 = vector.broadcast %59 : vector<1x512xf32> to vector<8x512xf32>
    %61 = arith.mulf %58, %60 : vector<8x512xf32>
    %62 = vector.extract_strided_slice %33 {offsets = [0, 3], sizes = [8, 1], strides = [1, 1]} : vector<8x9xf32> to vector<8x1xf32>
    %63 = vector.broadcast %62 : vector<8x1xf32> to vector<8x512xf32>
    %64 = arith.mulf %61, %63 : vector<8x512xf32>
    %65 = vector.extract_strided_slice %34 {offsets = [4, 0], sizes = [1, 512], strides = [1, 1]} : vector<9x512xf32> to vector<1x512xf32>
    %66 = vector.broadcast %65 : vector<1x512xf32> to vector<8x512xf32>
    %67 = arith.mulf %32, %66 : vector<8x512xf32>
    %68 = vector.extract_strided_slice %33 {offsets = [0, 4], sizes = [8, 1], strides = [1, 1]} : vector<8x9xf32> to vector<8x1xf32>
    %69 = vector.broadcast %68 : vector<8x1xf32> to vector<8x512xf32>
    %70 = arith.mulf %67, %69 : vector<8x512xf32>
    %71 = arith.addf %64, %70 : vector<8x512xf32>
    %c511_i32 = arith.constant 511 : i32
    %72 = tpu.dynamic_rotate %32 by %c511_i32 dim 1 : vector<8x512xf32>, i32 -> vector<8x512xf32>
    %73 = vector.extract_strided_slice %34 {offsets = [5, 0], sizes = [1, 512], strides = [1, 1]} : vector<9x512xf32> to vector<1x512xf32>
    %74 = vector.broadcast %73 : vector<1x512xf32> to vector<8x512xf32>
    %75 = arith.mulf %72, %74 : vector<8x512xf32>
    %76 = vector.extract_strided_slice %33 {offsets = [0, 5], sizes = [8, 1], strides = [1, 1]} : vector<8x9xf32> to vector<8x1xf32>
    %77 = vector.broadcast %76 : vector<8x1xf32> to vector<8x512xf32>
    %78 = arith.mulf %75, %77 : vector<8x512xf32>
    %79 = arith.addf %71, %78 : vector<8x512xf32>
    %c497_i32 = arith.constant 497 : i32
    %80 = tpu.dynamic_rotate %32 by %c497_i32 dim 1 : vector<8x512xf32>, i32 -> vector<8x512xf32>
    %81 = vector.extract_strided_slice %34 {offsets = [6, 0], sizes = [1, 512], strides = [1, 1]} : vector<9x512xf32> to vector<1x512xf32>
    %82 = vector.broadcast %81 : vector<1x512xf32> to vector<8x512xf32>
    %83 = arith.mulf %80, %82 : vector<8x512xf32>
    %84 = vector.extract_strided_slice %33 {offsets = [0, 6], sizes = [8, 1], strides = [1, 1]} : vector<8x9xf32> to vector<8x1xf32>
    %85 = vector.broadcast %84 : vector<8x1xf32> to vector<8x512xf32>
    %86 = arith.mulf %83, %85 : vector<8x512xf32>
    %c496_i32 = arith.constant 496 : i32
    %87 = tpu.dynamic_rotate %32 by %c496_i32 dim 1 : vector<8x512xf32>, i32 -> vector<8x512xf32>
    %88 = vector.extract_strided_slice %34 {offsets = [7, 0], sizes = [1, 512], strides = [1, 1]} : vector<9x512xf32> to vector<1x512xf32>
    %89 = vector.broadcast %88 : vector<1x512xf32> to vector<8x512xf32>
    %90 = arith.mulf %87, %89 : vector<8x512xf32>
    %91 = vector.extract_strided_slice %33 {offsets = [0, 7], sizes = [8, 1], strides = [1, 1]} : vector<8x9xf32> to vector<8x1xf32>
    %92 = vector.broadcast %91 : vector<8x1xf32> to vector<8x512xf32>
    %93 = arith.mulf %90, %92 : vector<8x512xf32>
    %94 = arith.addf %86, %93 : vector<8x512xf32>
    %c495_i32 = arith.constant 495 : i32
    %95 = tpu.dynamic_rotate %32 by %c495_i32 dim 1 : vector<8x512xf32>, i32 -> vector<8x512xf32>
    %96 = vector.extract_strided_slice %34 {offsets = [8, 0], sizes = [1, 512], strides = [1, 1]} : vector<9x512xf32> to vector<1x512xf32>
    %97 = vector.broadcast %96 : vector<1x512xf32> to vector<8x512xf32>
    %98 = arith.mulf %95, %97 : vector<8x512xf32>
    %99 = vector.extract_strided_slice %33 {offsets = [0, 8], sizes = [8, 1], strides = [1, 1]} : vector<8x9xf32> to vector<8x1xf32>
    %100 = vector.broadcast %99 : vector<8x1xf32> to vector<8x512xf32>
    %101 = arith.mulf %98, %100 : vector<8x512xf32>
    %102 = arith.addf %94, %101 : vector<8x512xf32>
    %103 = arith.addf %57, %79 : vector<8x512xf32>
    %104 = arith.addf %103, %102 : vector<8x512xf32>
    %c0_11 = arith.constant 0 : index
    %c1 = arith.constant 1 : index
    %105 = vector.load %arg5[%c0_11, %c1] : memref<8x3xf32, #tpu.memory_space<vmem>>, vector<8x1xf32>
    %106 = vector.broadcast %105 : vector<8x1xf32> to vector<8x512xf32>
    %107 = arith.addf %104, %106 : vector<8x512xf32>
    %cst_12 = arith.constant 0.000000e+00 : f32
    %cst_13 = arith.constant 6.000000e+00 : f32
    %108 = vector.broadcast %cst_12 : f32 to vector<8x512xf32>
    %109 = arith.maximumf %108, %107 : vector<8x512xf32>
    %110 = vector.broadcast %cst_13 : f32 to vector<8x512xf32>
    %111 = arith.minimumf %110, %109 : vector<8x512xf32>
    %c0_14 = arith.constant 0 : index
    %c0_15 = arith.constant 0 : index
    %112 = vector.load %arg4[%c0_14, %c0_15] : memref<4x8xf32, #tpu.memory_space<vmem>>, vector<4x8xf32>
    %113 = vector.extract_strided_slice %112 {offsets = [0, 0], sizes = [4, 1], strides = [1, 1]} : vector<4x8xf32> to vector<4x1xf32>
    %114 = vector.extract_strided_slice %111 {offsets = [0, 0], sizes = [1, 512], strides = [1, 1]} : vector<8x512xf32> to vector<1x512xf32>
    %115 = vector.broadcast %113 : vector<4x1xf32> to vector<4x512xf32>
    %116 = vector.broadcast %114 : vector<1x512xf32> to vector<4x512xf32>
    %117 = arith.mulf %115, %116 : vector<4x512xf32>
    %118 = vector.extract_strided_slice %112 {offsets = [0, 1], sizes = [4, 1], strides = [1, 1]} : vector<4x8xf32> to vector<4x1xf32>
    %119 = vector.extract_strided_slice %111 {offsets = [1, 0], sizes = [1, 512], strides = [1, 1]} : vector<8x512xf32> to vector<1x512xf32>
    %120 = vector.broadcast %118 : vector<4x1xf32> to vector<4x512xf32>
    %121 = vector.broadcast %119 : vector<1x512xf32> to vector<4x512xf32>
    %122 = arith.mulf %120, %121 : vector<4x512xf32>
    %123 = arith.addf %117, %122 : vector<4x512xf32>
    %124 = vector.extract_strided_slice %112 {offsets = [0, 2], sizes = [4, 1], strides = [1, 1]} : vector<4x8xf32> to vector<4x1xf32>
    %125 = vector.extract_strided_slice %111 {offsets = [2, 0], sizes = [1, 512], strides = [1, 1]} : vector<8x512xf32> to vector<1x512xf32>
    %126 = vector.broadcast %124 : vector<4x1xf32> to vector<4x512xf32>
    %127 = vector.broadcast %125 : vector<1x512xf32> to vector<4x512xf32>
    %128 = arith.mulf %126, %127 : vector<4x512xf32>
    %129 = arith.addf %123, %128 : vector<4x512xf32>
    %130 = vector.extract_strided_slice %112 {offsets = [0, 3], sizes = [4, 1], strides = [1, 1]} : vector<4x8xf32> to vector<4x1xf32>
    %131 = vector.extract_strided_slice %111 {offsets = [3, 0], sizes = [1, 512], strides = [1, 1]} : vector<8x512xf32> to vector<1x512xf32>
    %132 = vector.broadcast %130 : vector<4x1xf32> to vector<4x512xf32>
    %133 = vector.broadcast %131 : vector<1x512xf32> to vector<4x512xf32>
    %134 = arith.mulf %132, %133 : vector<4x512xf32>
    %135 = arith.addf %129, %134 : vector<4x512xf32>
    %136 = vector.extract_strided_slice %112 {offsets = [0, 4], sizes = [4, 1], strides = [1, 1]} : vector<4x8xf32> to vector<4x1xf32>
    %137 = vector.extract_strided_slice %111 {offsets = [4, 0], sizes = [1, 512], strides = [1, 1]} : vector<8x512xf32> to vector<1x512xf32>
    %138 = vector.broadcast %136 : vector<4x1xf32> to vector<4x512xf32>
    %139 = vector.broadcast %137 : vector<1x512xf32> to vector<4x512xf32>
    %140 = arith.mulf %138, %139 : vector<4x512xf32>
    %141 = arith.addf %135, %140 : vector<4x512xf32>
    %142 = vector.extract_strided_slice %112 {offsets = [0, 5], sizes = [4, 1], strides = [1, 1]} : vector<4x8xf32> to vector<4x1xf32>
    %143 = vector.extract_strided_slice %111 {offsets = [5, 0], sizes = [1, 512], strides = [1, 1]} : vector<8x512xf32> to vector<1x512xf32>
    %144 = vector.broadcast %142 : vector<4x1xf32> to vector<4x512xf32>
    %145 = vector.broadcast %143 : vector<1x512xf32> to vector<4x512xf32>
    %146 = arith.mulf %144, %145 : vector<4x512xf32>
    %147 = arith.addf %141, %146 : vector<4x512xf32>
    %148 = vector.extract_strided_slice %112 {offsets = [0, 6], sizes = [4, 1], strides = [1, 1]} : vector<4x8xf32> to vector<4x1xf32>
    %149 = vector.extract_strided_slice %111 {offsets = [6, 0], sizes = [1, 512], strides = [1, 1]} : vector<8x512xf32> to vector<1x512xf32>
    %150 = vector.broadcast %148 : vector<4x1xf32> to vector<4x512xf32>
    %151 = vector.broadcast %149 : vector<1x512xf32> to vector<4x512xf32>
    %152 = arith.mulf %150, %151 : vector<4x512xf32>
    %153 = arith.addf %147, %152 : vector<4x512xf32>
    %154 = vector.extract_strided_slice %112 {offsets = [0, 7], sizes = [4, 1], strides = [1, 1]} : vector<4x8xf32> to vector<4x1xf32>
    %155 = vector.extract_strided_slice %111 {offsets = [7, 0], sizes = [1, 512], strides = [1, 1]} : vector<8x512xf32> to vector<1x512xf32>
    %156 = vector.broadcast %154 : vector<4x1xf32> to vector<4x512xf32>
    %157 = vector.broadcast %155 : vector<1x512xf32> to vector<4x512xf32>
    %158 = arith.mulf %156, %157 : vector<4x512xf32>
    %159 = arith.addf %153, %158 : vector<4x512xf32>
    %c0_16 = arith.constant 0 : index
    %c2 = arith.constant 2 : index
    %160 = vector.load %arg5[%c0_16, %c2] : memref<8x3xf32, #tpu.memory_space<vmem>>, vector<4x1xf32>
    %161 = vector.broadcast %160 : vector<4x1xf32> to vector<4x512xf32>
    %162 = arith.addf %159, %161 : vector<4x512xf32>
    %163 = arith.addf %162, %1 : vector<4x512xf32>
    %c0_17 = arith.constant 0 : index
    %c0_18 = arith.constant 0 : index
    %c0_19 = arith.constant 0 : index
    %164 = vector.load %arg7[%c0_17, %c0_18, %c0_19] : memref<1x4x512xf32, #tpu.memory_space<vmem>>, vector<1x4x512xf32>
    %165 = vector.shape_cast %164 : vector<1x4x512xf32> to vector<4x512xf32>
    %166 = vector.shape_cast %163 : vector<4x512xf32> to vector<1x4x512xf32>
    tpu.vector_store %arg7[%c0_17, %c0_18, %c0_19], %166 {strides = array<i32>} : memref<1x4x512xf32, #tpu.memory_space<vmem>>, vector<1x4x512xf32>,
    return
  }
  func.func @transform_0(%arg0: i32) -> (i32, i32, i32) {
    %c0_i32 = arith.constant 0 : i32
    %c0_i32_0 = arith.constant 0 : i32
    %c0_i32_1 = arith.constant 0 : i32
    return %arg0, %c0_i32, %c0_i32_0 : i32, i32, i32
  }
  func.func @transform_1(%arg0: i32) -> (i32, i32) {
    %c0_i32 = arith.constant 0 : i32
    %c0_i32_0 = arith.constant 0 : i32
    %c0_i32_1 = arith.constant 0 : i32
    return %c0_i32, %c0_i32_0 : i32, i32
  }
  func.func @transform_2(%arg0: i32) -> (i32, i32) {
    %c0_i32 = arith.constant 0 : i32
    %c0_i32_0 = arith.constant 0 : i32
    %c0_i32_1 = arith.constant 0 : i32
    return %c0_i32, %c0_i32_0 : i32, i32
  }
  func.func @transform_3(%arg0: i32) -> (i32, i32) {
    %c0_i32 = arith.constant 0 : i32
    %c0_i32_0 = arith.constant 0 : i32
    %c0_i32_1 = arith.constant 0 : i32
    return %c0_i32, %c0_i32_0 : i32, i32
  }
  func.func @transform_4(%arg0: i32) -> (i32, i32) {
    %c0_i32 = arith.constant 0 : i32
    %c0_i32_0 = arith.constant 0 : i32
    %c0_i32_1 = arith.constant 0 : i32
    return %c0_i32, %c0_i32_0 : i32, i32
  }
  func.func @transform_5(%arg0: i32) -> (i32, i32) {
    %c0_i32 = arith.constant 0 : i32
    %c0_i32_0 = arith.constant 0 : i32
    %c0_i32_1 = arith.constant 0 : i32
    return %c0_i32, %c0_i32_0 : i32, i32
  }
  func.func @transform_6(%arg0: i32) -> (i32, i32, i32) {
    %c0_i32 = arith.constant 0 : i32
    %c0_i32_0 = arith.constant 0 : i32
    %c0_i32_1 = arith.constant 0 : i32
    return %arg0, %c0_i32, %c0_i32_0 : i32, i32, i32
  }
}

</mosaic_0001>

<bundles_post_ra>
// kernel: tpu_custom_call.1
= control target key start
LH: loop header
LB: loop body
LE: loop exit
PB: predicated region body
PF: predicated region fallthrough
CT: control target
= control target key end

     0   :  { %11 = vsyncpa [#allocation3], 0  ;;  %s1518_s0 = inlined_call_operand.vmem [shape: f32[1,4,512], index: 0, kind: input, shape index: {}]   ;;  %s1519_s1 = inlined_call_operand.vmem [shape: f32[8,4], index: 1, kind: input, shape index: {}]   ;;  %s1520_s2 = inlined_call_operand.vmem [shape: f32[8,9], index: 2, kind: input, shape index: {}]   ;;  %s1521_s3 = inlined_call_operand.vmem [shape: f32[4,8], index: 3, kind: input, shape index: {}]   ;;  %s1522_s4 = inlined_call_operand.vmem [shape: f32[8,3], index: 4, kind: input, shape index: {}]   ;;  %s1523_s5 = inlined_call_operand.hbm [shape: f32[9,512], index: 5, kind: input, shape index: {}]   ;;  %s1524_s6 = inlined_call_operand.hbm [shape: f32[1,4,512], index: 6, kind: output, shape index: {}]  }
   0x1   :  { %12 = vsyncpa [#allocation4], 0  ;;  %s1029_s21 = smov [#allocation2]   ;;  %s981_s25 = scalar_lea.hbm %s1523_s5, 1024 }
   0x2   :  { %s28_s22 = sshll.u32 %s1029_s21, 4  ;;  %p982_p0 = scmp.ne.s32.totalorder %s1523_s5, %s981_s25  ;;  %s29_s22 = int_to_ptr.vmem [resolvable:$true] %s28_s22 }
   0x3   :  { %p985_p1 = scmp.lt.u32.totalorder %s981_s25, %s1523_s5 }
   0x5   :  { %p987_p2 = pnand %p985_p1, %p982_p0 }
   0x7   :  { %990 = shalt.err (!%p987_p2)
}
   0x8   :  { %s991_s30 = scalar_lea.vmem %s29_s22, 1024  ;;  %p996_p4 = scmp.lt.s32.totalorder %s29_s22, %s29_s22 }
   0x9   :  { %p992_p3 = scmp.ne.s32.totalorder %s29_s22, %s991_s30  ;;  %p997_p5 = scmp.lt.s32.totalorder %s991_s30, %s991_s30 }
   0xb   :  { %p998_p6 = por %p997_p5, %p996_p4 }
   0xd   :  { %p999_p7 = pnand %p998_p6, %p992_p3 }
   0xf   :  { %1002 = shalt.err (!%p999_p7)
}
  0x10   :  { %s1030_s7 = smov 512   ;;  %s1031_s8 = smov 32  }
  0x11   :  { %34 = dma.hbm_to_vmem [thread:$0]  %s1523_s5, 1024, %s29_s22, [#allocation3], %s1030_s7, %s1030_s7, %s1031_s8  }
  0x12   :  { %1025 = dma.done.wait [#allocation3], 1024  }
  0x13   :  { %1026 = vsyncadd [#allocation3], 4294966272  ;;  %v1032_v0 = vmov 0   ;;  %v1033_v1 = vmov 2   ;;  %v40_v2 = vld [vmem:[%s1519_s1] sm:$0xff]  ;;  %v1034_v3 = vmov 1   ;;  %v48_v12 = vlaneseq }
  0x14   :  { %956 = vset.pattern.permute.xlu0 %v1032_v0  ;;  %958 = vset.pattern.permute.xlu1 %v1033_v1  ;;  %v1035_v4 = vmov 3   ;;  %v1106_v5 = vld [vmem:[%s1522_s4] sm:$0xff]  ;;  %v1036_v7 = vmov 4   ;;  %v1037_v8 = vmov 5   ;;  %v1038_v9 = vmov 6   ;;  %v1132_v17 = vld [vmem:[%s1518_s0 + $0x8] sm:$0xff] }
  0x15   :  { %43 = vperm.xlu0 %956, %v40_v2   ;;  %137 = vperm.xlu1 %958, %v40_v2   ;;  %v250_v6 = vld [vmem:[%s1520_s2] sm:$0xff]  ;;  %v1039_v10 = vmov 8   ;;  %v1040_v11 = vmov 7   ;;  %v49_v13 = vshrl.u32 %v48_v12, 7  ;;  %s1042_s18 = smov 16   ;;  %s1043_s19 = smov 15  }
  0x16   :  { %v1127_v16 = vld [vmem:[%s1518_s0] sm:$0xff]  ;;  %s1041_s0 = smov 17   ;;  %s1044_s20 = smov 1  }
  0x17   :  { %v1120_v14 = vsub.s32 0, %v49_v13  ;;  %v1122_v15 = vsub.s32 4, %v49_v13  ;;  %v1134_v18 = vsub.s32 2, %v49_v13  ;;  %v1136_v19 = vsub.s32 6, %v49_v13  ;;  %s1045_s21 = smov 127   ;;  %s1046_s22 = smov 113  }
  0x18   :  { %v1138_v20 = vsub.s32 1, %v49_v13  ;;  %v1140_v21 = vsub.s32 5, %v49_v13  ;;  %v1142_v22 = vsub.s32 3, %v49_v13  ;;  %v1144_v23 = vsub.s32 7, %v49_v13  ;;  %s1047_s23 = smov 112   ;;  %s1048_s24 = smov 111  }
  0x19   :  { %957 = vset.pattern.permute.xlu0 %v1034_v3  ;;  %959 = vset.pattern.permute.xlu1 %v1035_v4  ;;  %v51_v24 = vrot.slane %v1127_v16, %v1120_v14  ;;  %v55_v25 = vrot.slane %v1127_v16, %v1122_v15  ;;  %v59_v26 = vrot.slane %v1132_v17, %v1120_v14 }
  0x1a   :  { %89 = vperm.xlu0 %957, %v40_v2   ;;  %185 = vperm.xlu1 %959, %v40_v2   ;;  %v63_v27 = vrot.slane %v1132_v17, %v1122_v15  ;;  %v143_v28 = vrot.slane %v1127_v16, %v1134_v18  ;;  %v147_v29 = vrot.slane %v1127_v16, %v1136_v19 }
  0x1b   :  { %v151_v30 = vrot.slane %v1132_v17, %v1134_v18  ;;  %v155_v31 = vrot.slane %v1132_v17, %v1136_v19  ;;  %v95_v32 = vrot.slane %v1127_v16, %v1138_v20  ;;  %v99_v33 = vrot.slane %v1127_v16, %v1140_v21 }
  0x1c   :  { %v103_v34 = vrot.slane %v1132_v17, %v1138_v20  ;;  %v107_v35 = vrot.slane %v1132_v17, %v1140_v21  ;;  %v191_v36 = vrot.slane %v1127_v16, %v1142_v22  ;;  %v195_v37 = vrot.slane %v1127_v16, %v1144_v23 }
  0x1d   :  { %v199_v38 = vrot.slane %v1132_v17, %v1142_v22  ;;  %v203_v39 = vrot.slane %v1132_v17, %v1144_v23  ;;  %v71_v41 = vrot.slane %v51_v24, %v1120_v14  ;;  %v75_v42 = vrot.slane %v55_v25, %v1120_v14 }
  0x1e   :  { %960 = vset.pattern.permute.xlu1 %v1032_v0  ;;  %961 = vset.pattern.permute.xlu0 %v1032_v0  ;;  %v79_v43 = vrot.slane %v59_v26, %v1120_v14  ;;  %v83_v44 = vrot.slane %v63_v27, %v1120_v14  ;;  %v163_v46 = vrot.slane %v143_v28, %v1134_v18 }
  0x1f   :  { %235 = vperm.xlu1 %960, %v1106_v5   ;;  %296 = vperm.xlu0 %961, %v250_v6   ;;  %v167_v47 = vrot.slane %v147_v29, %v1134_v18  ;;  %v171_v48 = vrot.slane %v151_v30, %v1134_v18  ;;  %v175_v49 = vrot.slane %v155_v31, %v1134_v18 }
  0x20   :  { %v115_v50 = vrot.slane %v95_v32, %v1138_v20  ;;  %v119_v51 = vrot.slane %v99_v33, %v1138_v20  ;;  %v123_v52 = vrot.slane %v103_v34, %v1138_v20  ;;  %v127_v53 = vrot.slane %v107_v35, %v1138_v20 }
  0x21   :  { %v211_v54 = vrot.slane %v191_v36, %v1142_v22  ;;  %v215_v55 = vrot.slane %v195_v37, %v1142_v22  ;;  %v219_v56 = vrot.slane %v199_v38, %v1142_v22  ;;  %v223_v57 = vrot.slane %v203_v39, %v1142_v22 }
  0x23   :  { %963 = vset.pattern.permute.xlu1 %v1035_v4  ;;  %962 = vset.pattern.permute.xlu0 %v1033_v1 }
  0x24   :  { %427 = vperm.xlu1 %963, %v250_v6   ;;  %382 = vperm.xlu0 %962, %v250_v6  }
  0x28   :  { %964 = vset.pattern.permute.xlu1 %v1036_v7  ;;  %965 = vset.pattern.permute.xlu0 %v1037_v8 }
  0x29   :  { %455 = vperm.xlu1 %964, %v250_v6   ;;  %500 = vperm.xlu0 %965, %v250_v6  }
  0x2d   :  { %966 = vset.pattern.permute.xlu1 %v1038_v9  ;;  %968 = vset.pattern.permute.xlu0 %v1039_v10 }
  0x2e   :  { %545 = vperm.xlu1 %966, %v250_v6   ;;  %631 = vperm.xlu0 %968, %v250_v6  }
  0x32   :  { %967 = vset.pattern.permute.xlu1 %v1040_v11  ;;  %969 = vset.pattern.permute.xlu0 %v1034_v3 }
  0x33   :  { %586 = vperm.xlu1 %967, %v250_v6   ;;  %337 = vperm.xlu0 %969, %v250_v6  }
  0x37   :  { %970 = vset.pattern.permute.xlu1 %v1032_v0 }
  0x94   :  { %v44_v40 = vpop.permute.xlu0 %43  ;;  %v138_v45 = vpop.permute.xlu1 %137 }
  0x95   :  { %v84_v58 = vmul.f32 %v71_v41, %v44_v40  ;;  %v85_v59 = vmul.f32 %v75_v42, %v44_v40  ;;  %v86_v60 = vmul.f32 %v79_v43, %v44_v40  ;;  %v87_v61 = vmul.f32 %v83_v44, %v44_v40  ;;  %v1194_v44 = vld [vmem:[#allocation2] sm:$0xff] }
  0x96   :  { %v176_v62 = vmul.f32 %v163_v46, %v138_v45  ;;  %v177_v63 = vmul.f32 %v167_v47, %v138_v45  ;;  %v178_v0 = vmul.f32 %v171_v48, %v138_v45  ;;  %v179_v2 = vmul.f32 %v175_v49, %v138_v45  ;;  %v1196_v45 = vld [vmem:[#allocation2 + $0x10] sm:$0xff] }
  0x99   :  { %v90_v6 = vpop.permute.xlu0 %89  ;;  %v186_v10 = vpop.permute.xlu1 %185 }
  0x9a   :  { %v128_v13 = vmul.f32 %v115_v50, %v90_v6  ;;  %v129_v24 = vmul.f32 %v119_v51, %v90_v6  ;;  %v130_v25 = vmul.f32 %v123_v52, %v90_v6  ;;  %v131_v26 = vmul.f32 %v127_v53, %v90_v6  ;;  %v666_v6 = vld [vmem:[%s1521_s3] sm:$0xf]  ;;  %s1049_s3 = smov [#allocation5]  }
  0x9b   :  { %v224_v27 = vmul.f32 %v211_v54, %v186_v10  ;;  %v225_v28 = vmul.f32 %v215_v55, %v186_v10  ;;  %v226_v29 = vmul.f32 %v219_v56, %v186_v10  ;;  %v227_v30 = vmul.f32 %v223_v57, %v186_v10 }
  0x9c   :  { %v132_v31 = vadd.f32 %v128_v13, %v84_v58  ;;  %v133_v32 = vadd.f32 %v129_v24, %v85_v59  ;;  %v134_v33 = vadd.f32 %v130_v25, %v86_v60  ;;  %v135_v34 = vadd.f32 %v131_v26, %v87_v61  ;;  %v1260_v25 = vld [vmem:[#allocation2 + $0x8] sm:$0xff] }
  0x9d   :  { %v437_v51 = vrot.slane %v1194_v44, %v1122_v15  ;;  %v445_v55 = vrot.slane %v1196_v45, %v1122_v15 }
  0x9e   :  { %v236_v35 = vpop.permute.xlu1 %235  ;;  %v180_v36 = vadd.f32 %v176_v62, %v132_v31  ;;  %v181_v37 = vadd.f32 %v177_v63, %v133_v32  ;;  %v182_v38 = vadd.f32 %v178_v0, %v134_v33  ;;  %v183_v39 = vadd.f32 %v179_v2, %v135_v34  ;;  %v297_v10 = vpop.permute.xlu0 %296 }
  0xa0   :  { %v228_v40 = vadd.f32 %v224_v27, %v180_v36  ;;  %v229_v41 = vadd.f32 %v225_v28, %v181_v37  ;;  %v230_v42 = vadd.f32 %v226_v29, %v182_v38  ;;  %v231_v43 = vadd.f32 %v227_v30, %v183_v39  ;;  %v1265_v27 = vld [vmem:[#allocation2 + $0x18] sm:$0xff] }
  0xa1   :  { %v277_v30 = vrot.slane %v1194_v44, %v1120_v14  ;;  %v289_v31 = vrot.slane %v1265_v27, %v1120_v14 }
  0xa2   :  { %v238_v46 = vadd.f32 %v236_v35, %v228_v40  ;;  %v239_v47 = vadd.f32 %v236_v35, %v229_v41  ;;  %v240_v48 = vadd.f32 %v236_v35, %v230_v42  ;;  %v241_v49 = vadd.f32 %v236_v35, %v231_v43 }
  0xa3   :  { %v1198_v50 = vpop.permute.xlu1 %427 }
  0xa4   :  { %v242_v52 = vmax.f32 %v238_v46, 0.0  ;;  %v243_v53 = vmax.f32 %v239_v47, 0.0  ;;  %v244_v54 = vmax.f32 %v240_v48, 0.0  ;;  %v245_v56 = vmax.f32 %v241_v49, 0.0 }
  0xa6   :  { %v246_v57 = vmin.f32 %v242_v52, 6.0  ;;  %v1204_v58 = vmin.f32 %v243_v53, 6.0  ;;  %v248_v59 = vmin.f32 %v244_v54, 6.0  ;;  %v1209_v63 = vmin.f32 %v245_v56, 6.0 }
  0xa7   :  { %v327_v52 = vrot.slane %v1196_v45, %v1138_v20 }
  0xa8   :  { %261 = vrot.lane.b32.xlu1 %v1204_v58, %s1041_s0  ;;  %259 = vrot.lane.b32.xlu0 %v246_v57, %s1041_s0  ;;  %v1207_v60 = vpop.permute.xlu1 %455  ;;  %v450_v61 = vmul.f32 %v437_v51, %v246_v57  ;;  %v452_v62 = vmul.f32 %v445_v55, %v248_v59  ;;  %v323_v51 = vrot.slane %v1260_v25, %v1138_v20 }
  0xaa   :  { %v1212_v0 = vmul.f32 %v1207_v60, %v450_v61  ;;  %v1215_v2 = vmul.f32 %v1207_v60, %v452_v62  ;;  %v331_v61 = vrot.slane %v1265_v27, %v1138_v20 }
  0xac   :  { %265 = vrot.lane.b32.xlu1 %v1209_v63, %s1041_s0  ;;  %263 = vrot.lane.b32.xlu0 %v248_v59, %s1041_s0 }
  0xad   :  { %v1251_v13 = vpop.permute.xlu1 %545 }
  0xb0   :  { %303 = vrot.lane.b32.xlu1 %v246_v57, %s1042_s18  ;;  %307 = vrot.lane.b32.xlu0 %v248_v59, %s1042_s18 }
  0xb2   :  { %v1255_v24 = vpop.permute.xlu1 %586 }
  0xb4   :  { %305 = vrot.lane.b32.xlu1 %v1204_v58, %s1042_s18  ;;  %352 = vrot.lane.b32.xlu0 %v248_v59, %s1043_s19 }
  0xb8   :  { %309 = vrot.lane.b32.xlu1 %v1209_v63, %s1042_s18  ;;  %393 = vrot.lane.b32.xlu0 %v246_v57, %s1044_s20 }
  0xbc   :  { %348 = vrot.lane.b32.xlu1 %v246_v57, %s1043_s19  ;;  %397 = vrot.lane.b32.xlu0 %v248_v59, %s1044_s20 }
  0xc0   :  { %350 = vrot.lane.b32.xlu1 %v1204_v58, %s1043_s19  ;;  %470 = vrot.lane.b32.xlu0 %v248_v59, %s1045_s21 }
  0xc4   :  { %354 = vrot.lane.b32.xlu1 %v1209_v63, %s1043_s19  ;;  %511 = vrot.lane.b32.xlu0 %v246_v57, %s1046_s22 }
  0xc8   :  { %395 = vrot.lane.b32.xlu1 %v1204_v58, %s1044_s20  ;;  %515 = vrot.lane.b32.xlu0 %v248_v59, %s1046_s22 }
  0xcc   :  { %399 = vrot.lane.b32.xlu1 %v1209_v63, %s1044_s20  ;;  %552 = vrot.lane.b32.xlu0 %v246_v57, %s1047_s23 }
  0xd0   :  { %466 = vrot.lane.b32.xlu1 %v246_v57, %s1045_s21  ;;  %556 = vrot.lane.b32.xlu0 %v248_v59, %s1047_s23 }
  0xd4   :  { %468 = vrot.lane.b32.xlu1 %v1204_v58, %s1045_s21  ;;  %597 = vrot.lane.b32.xlu0 %v246_v57, %s1048_s24 }
  0xd8   :  { %472 = vrot.lane.b32.xlu1 %v1209_v63, %s1045_s21  ;;  %601 = vrot.lane.b32.xlu0 %v248_v59, %s1048_s24  ;;  %v319_v59 = vrot.slane %v1194_v44, %v1138_v20 }
  0xdc   :  { %513 = vrot.lane.b32.xlu1 %v1204_v58, %s1046_s22  ;;  %651 = vperm.xlu0 %969, %v1106_v5   ;;  %v888_v5 = vld [vmem:[%s1522_s4] sm:$0xf]  ;;  %s922_s4 = sshll.u32 %s1049_s3, 4  ;;  %s923_s4 = int_to_ptr.vmem [resolvable:$true] %s922_s4 }
  0xdd   :  { %s1003_s29 = scalar_lea.vmem %s923_s4, 256  ;;  %p1008_p9 = scmp.lt.s32.totalorder %s923_s4, %s923_s4 }
  0xde   :  { %p1004_p8 = scmp.ne.s32.totalorder %s923_s4, %s1003_s29  ;;  %p1009_p10 = scmp.lt.s32.totalorder %s1003_s29, %s1003_s29 }
  0xe0   :  { %517 = vrot.lane.b32.xlu1 %v1209_v63, %s1046_s22  ;;  %972 = vset.pattern.permute.xlu0 %v1033_v1  ;;  %p1010_p11 = por %p1009_p10, %p1008_p9 }
  0xe1   :  { %721 = vperm.xlu0 %972, %v666_v6  }
  0xe2   :  { %p1011_p12 = pnand %p1010_p11, %p1004_p8 }
  0xe4   :  { %554 = vrot.lane.b32.xlu1 %v1204_v58, %s1047_s23 }
  0xe5   :  { %975 = vset.pattern.permute.xlu0 %v1037_v8  ;;  %v1245_v8 = vpop.permute.xlu0 %382 }
  0xe6   :  { %805 = vperm.xlu0 %975, %v666_v6  }
  0xe8   :  { %558 = vrot.lane.b32.xlu1 %v1209_v63, %s1047_s23 }
  0xea   :  { %978 = vset.pattern.permute.xlu0 %v1033_v1  ;;  %v1248_v1 = vpop.permute.xlu0 %500 }
  0xeb   :  { %891 = vperm.xlu0 %978, %v888_v5  }
  0xec   :  { %599 = vrot.lane.b32.xlu1 %v1204_v58, %s1048_s24 }
  0xf0   :  { %603 = vrot.lane.b32.xlu1 %v1209_v63, %s1048_s24 }
  0xf4   :  { %669 = vperm.xlu1 %970, %v666_v6  }
  0xf8   :  { %971 = vset.pattern.permute.xlu1 %v1034_v3  ;;  %v1253_v3 = vpop.permute.xlu0 %631 }
  0xf9   :  { %693 = vperm.xlu1 %971, %v666_v6  }
  0xfd   :  { %973 = vset.pattern.permute.xlu1 %v1035_v4  ;;  %v338_v4 = vpop.permute.xlu0 %337 }
  0xfe   :  { %749 = vperm.xlu1 %973, %v666_v6  }
 0x102   :  { %974 = vset.pattern.permute.xlu1 %v1036_v7  ;;  %v1258_v7 = vand.u32 127, %v48_v12  ;;  %v285_v12 = vrot.slane %v1196_v45, %v1120_v14 }
 0x103   :  { %777 = vperm.xlu1 %974, %v666_v6  }
 0x104   :  { %vm269_vm0 = vcmp.lt.s32.totalorder %v1258_v7, 17  ;;  %vm311_vm1 = vcmp.lt.s32.totalorder %v1258_v7, 16  ;;  %vm356_vm2 = vcmp.lt.s32.totalorder %v1258_v7, 15  ;;  %vm401_vm3 = vcmp.lt.s32.totalorder %v1258_v7, 1 }
 0x105   :  { %vm474_vm4 = vcmp.lt.s32.totalorder %v1258_v7, 127  ;;  %vm560_vm5 = vcmp.lt.s32.totalorder %v1258_v7, 112  ;;  %vm519_vm6 = vcmp.lt.s32.totalorder %v1258_v7, 113  ;;  %vm605_vm7 = vcmp.lt.s32.totalorder %v1258_v7, 111 }
 0x107   :  { %976 = vset.pattern.permute.xlu1 %v1038_v9  ;;  %v281_v9 = vrot.slane %v1260_v25, %v1120_v14 }
 0x108   :  { %833 = vperm.xlu1 %976, %v666_v6  }
 0x10c   :  { %977 = vset.pattern.permute.xlu1 %v1040_v11 }
 0x10d   :  { %861 = vperm.xlu1 %977, %v666_v6  }
 0x11a   :  { %v262_v26 = vpop.permute.xlu1 %261  ;;  %v260_v11 = vpop.permute.xlu0 %259 }
 0x11b   :  { %v272_v28 = vsel %vm269_vm0, %v260_v11, %v262_v26 }
 0x11c   :  { %v291_v29 = vmul.f32 %v281_v9, %v272_v28  ;;  %v368_v9 = vrot.slane %v1260_v25, %v1134_v18 }
 0x11e   :  { %v300_v32 = vmul.f32 %v297_v10, %v291_v29  ;;  %v266_v33 = vpop.permute.xlu1 %265  ;;  %v264_v34 = vpop.permute.xlu0 %263 }
 0x11f   :  { %v273_v35 = vsel %vm269_vm0, %v266_v33, %v260_v11  ;;  %v270_v36 = vsel %vm269_vm0, %v264_v34, %v266_v33  ;;  %v271_v37 = vsel %vm269_vm0, %v262_v26, %v264_v34  ;;  %v372_v26 = vrot.slane %v1196_v45, %v1134_v18 }
 0x120   :  { %v290_v38 = vmul.f32 %v277_v30, %v273_v35  ;;  %v292_v39 = vmul.f32 %v285_v12, %v271_v37  ;;  %v293_v40 = vmul.f32 %v289_v31, %v270_v36  ;;  %v364_v37 = vrot.slane %v1194_v44, %v1134_v18 }
 0x122   :  { %v299_v41 = vmul.f32 %v297_v10, %v290_v38  ;;  %v301_v42 = vmul.f32 %v297_v10, %v292_v39  ;;  %v302_v43 = vmul.f32 %v297_v10, %v293_v40  ;;  %v304_v46 = vpop.permute.xlu1 %303  ;;  %v308_v47 = vpop.permute.xlu0 %307  ;;  %v376_v38 = vrot.slane %v1265_v27, %v1134_v18 }
 0x126   :  { %v306_v48 = vpop.permute.xlu1 %305  ;;  %v353_v49 = vpop.permute.xlu0 %352 }
 0x127   :  { %v313_v53 = vsel %vm311_vm1, %v306_v48, %v308_v47  ;;  %v314_v54 = vsel %vm311_vm1, %v304_v46, %v306_v48 }
 0x128   :  { %v333_v56 = vmul.f32 %v323_v51, %v314_v54  ;;  %v334_v57 = vmul.f32 %v327_v52, %v313_v53 }
 0x12a   :  { %v310_v55 = vpop.permute.xlu1 %309  ;;  %v394_v62 = vpop.permute.xlu0 %393  ;;  %v341_v11 = vmul.f32 %v338_v4, %v333_v56  ;;  %v342_v28 = vmul.f32 %v338_v4, %v334_v57 }
 0x12b   :  { %v312_v5 = vsel %vm311_vm1, %v308_v47, %v310_v55  ;;  %v315_v10 = vsel %vm311_vm1, %v310_v55, %v304_v46 }
 0x12c   :  { %v332_v29 = vmul.f32 %v319_v59, %v315_v10  ;;  %v335_v30 = vmul.f32 %v331_v61, %v312_v5  ;;  %v345_v39 = vadd.f32 %v341_v11, %v300_v32  ;;  %v346_v40 = vadd.f32 %v342_v28, %v301_v42 }
 0x12e   :  { %v349_v6 = vpop.permute.xlu1 %348  ;;  %v398_v34 = vpop.permute.xlu0 %397  ;;  %v340_v46 = vmul.f32 %v338_v4, %v332_v29  ;;  %v343_v47 = vmul.f32 %v338_v4, %v335_v30  ;;  %v421_v30 = vrot.slane %v1265_v27, %v1142_v22 }
 0x130   :  { %v344_v42 = vadd.f32 %v340_v46, %v299_v41  ;;  %v347_v59 = vadd.f32 %v343_v47, %v302_v43  ;;  %v441_v41 = vrot.slane %v1260_v25, %v1122_v15 }
 0x132   :  { %v351_v12 = vpop.permute.xlu1 %350  ;;  %v471_v4 = vpop.permute.xlu0 %470 }
 0x133   :  { %v358_v31 = vsel %vm356_vm2, %v351_v12, %v353_v49  ;;  %v359_v33 = vsel %vm356_vm2, %v349_v6, %v351_v12 }
 0x134   :  { %v378_v35 = vmul.f32 %v368_v9, %v359_v33  ;;  %v379_v36 = vmul.f32 %v372_v26, %v358_v31 }
 0x136   :  { %v386_v48 = vmul.f32 %v1245_v8, %v378_v35  ;;  %v387_v51 = vmul.f32 %v1245_v8, %v379_v36  ;;  %v355_v52 = vpop.permute.xlu1 %354  ;;  %v1314_v29 = vpop.permute.xlu0 %511 }
 0x137   :  { %v357_v53 = vsel %vm356_vm2, %v353_v49, %v355_v52  ;;  %v360_v54 = vsel %vm356_vm2, %v355_v52, %v349_v6  ;;  %v413_v49 = vrot.slane %v1260_v25, %v1142_v22  ;;  %v409_v6 = vrot.slane %v1194_v44, %v1142_v22 }
 0x138   :  { %v1301_v55 = vadd.f32 %v386_v48, %v345_v39  ;;  %v1303_v56 = vadd.f32 %v387_v51, %v346_v40  ;;  %v377_v57 = vmul.f32 %v364_v37, %v360_v54  ;;  %v380_v32 = vmul.f32 %v376_v38, %v357_v53 }
 0x139   :  { %v449_v37 = vrot.slane %v1265_v27, %v1122_v15  ;;  %v451_v38 = vmul.f32 %v441_v41, %v1204_v58  ;;  %v486_v39 = vrot.slane %v1260_v25, %v1140_v21 }
 0x13a   :  { %v385_v61 = vmul.f32 %v1245_v8, %v377_v57  ;;  %v388_v5 = vmul.f32 %v1245_v8, %v380_v32  ;;  %v396_v10 = vpop.permute.xlu1 %395  ;;  %v417_v8 = vrot.slane %v1196_v45, %v1142_v22 }
 0x13b   :  { %v404_v43 = vsel %vm401_vm3, %v394_v62, %v396_v10  ;;  %v403_v12 = vsel %vm401_vm3, %v396_v10, %v398_v34  ;;  %v453_v52 = vmul.f32 %v449_v37, %v1209_v63  ;;  %v459_v58 = vmul.f32 %v1207_v60, %v451_v38 }
 0x13c   :  { %v389_v9 = vadd.f32 %v385_v61, %v344_v42  ;;  %v392_v26 = vadd.f32 %v388_v5, %v347_v59  ;;  %v423_v31 = vmul.f32 %v413_v49, %v404_v43  ;;  %v424_v40 = vmul.f32 %v417_v8, %v403_v12 }
 0x13d   :  { %v490_v42 = vrot.slane %v1196_v45, %v1140_v21  ;;  %v494_v59 = vrot.slane %v1265_v27, %v1140_v21  ;;  %v461_v41 = vmul.f32 %v1207_v60, %v453_v52 }
 0x13e   :  { %v400_v11 = vpop.permute.xlu1 %399  ;;  %v431_v47 = vmul.f32 %v1198_v50, %v423_v31  ;;  %v432_v61 = vmul.f32 %v1198_v50, %v424_v40 }
 0x13f   :  { %v405_v28 = vsel %vm401_vm3, %v400_v11, %v394_v62  ;;  %v402_v33 = vsel %vm401_vm3, %v398_v34, %v400_v11  ;;  %v482_v62 = vrot.slane %v1194_v44, %v1140_v21  ;;  %v1329_v34 = vpop.permute.xlu0 %515 }
 0x140   :  { %v422_v35 = vmul.f32 %v409_v6, %v405_v28  ;;  %v425_v46 = vmul.f32 %v421_v30, %v402_v33  ;;  %v463_v5 = vadd.f32 %v459_v58, %v431_v47 }
 0x142   :  { %v467_v36 = vpop.permute.xlu1 %466  ;;  %v430_v48 = vmul.f32 %v1198_v50, %v422_v35  ;;  %v433_v63 = vmul.f32 %v1198_v50, %v425_v46 }
 0x143   :  { %v553_v8 = vpop.permute.xlu0 %552 }
 0x144   :  { %v462_v10 = vadd.f32 %v1212_v0, %v430_v48  ;;  %v464_v0 = vadd.f32 %v1215_v2, %v432_v61  ;;  %v465_v33 = vadd.f32 %v461_v41, %v433_v63  ;;  %v527_v48 = vrot.slane %v1194_v44, %v1136_v19 }
 0x146   :  { %v469_v51 = vpop.permute.xlu1 %468 }
 0x147   :  { %v476_v53 = vsel %vm474_vm4, %v469_v51, %v471_v4  ;;  %v477_v54 = vsel %vm474_vm4, %v467_v36, %v469_v51  ;;  %v531_v51 = vrot.slane %v1260_v25, %v1136_v19 }
 0x148   :  { %v495_v57 = vmul.f32 %v482_v62, %v477_v54  ;;  %v496_v32 = vmul.f32 %v486_v39, %v476_v53  ;;  %v557_v39 = vpop.permute.xlu0 %556  ;;  %v576_v53 = vrot.slane %v1196_v45, %v1144_v23  ;;  %v580_v54 = vrot.slane %v1265_v27, %v1144_v23 }
 0x14a   :  { %v503_v49 = vmul.f32 %v1248_v1, %v495_v57  ;;  %v504_v6 = vmul.f32 %v1248_v1, %v496_v32  ;;  %v473_v11 = vpop.permute.xlu1 %472 }
 0x14b   :  { %v475_v43 = vsel %vm474_vm4, %v471_v4, %v473_v11  ;;  %v478_v28 = vsel %vm474_vm4, %v473_v11, %v467_v36  ;;  %v932_v11 = vld [vmem:[#allocation2 + $0x28] ss:$0 sm:$0xff] }
 0x14c   :  { %v507_v30 = vadd.f32 %v503_v49, %v462_v10  ;;  %v508_v12 = vadd.f32 %v504_v6, %v463_v5  ;;  %v497_v50 = vmul.f32 %v490_v42, %v475_v43  ;;  %v498_v31 = vmul.f32 %v494_v59, %v478_v28  ;;  %v931_v6 = vld [vmem:[#allocation2 + $0x20] ss:$0 sm:$0xff] }
 0x14d   :  { %v539_v42 = vrot.slane %v1265_v27, %v1136_v19 }
 0x14e   :  { %v1353_v35 = vadd.f32 %v507_v30, %v389_v9  ;;  %v1356_v37 = vadd.f32 %v508_v12, %v1301_v55  ;;  %v505_v60 = vmul.f32 %v1248_v1, %v497_v50  ;;  %v506_v4 = vmul.f32 %v1248_v1, %v498_v31  ;;  %v514_v38 = vpop.permute.xlu1 %513 }
 0x14f   :  { %v568_v55 = vrot.slane %v1194_v44, %v1144_v23  ;;  %v572_v1 = vrot.slane %v1260_v25, %v1144_v23  ;;  %v521_v52 = vsel %vm519_vm6, %v514_v38, %v1329_v34  ;;  %v522_v58 = vsel %vm519_vm6, %v1314_v29, %v514_v38  ;;  %v933_v38 = vld [vmem:[#allocation2 + $0x30] ss:$0 sm:$0xff] }
 0x150   :  { %v509_v62 = vadd.f32 %v505_v60, %v464_v0  ;;  %v510_v36 = vadd.f32 %v506_v4, %v465_v33  ;;  %v535_v44 = vrot.slane %v1196_v45, %v1136_v19  ;;  %v540_v63 = vmul.f32 %v527_v48, %v522_v58 }
 0x151   :  { %v541_v5 = vmul.f32 %v531_v51, %v521_v52 }
 0x152   :  { %v1361_v40 = vadd.f32 %v509_v62, %v1303_v56  ;;  %v1363_v46 = vadd.f32 %v510_v36, %v392_v26  ;;  %v518_v2 = vpop.permute.xlu1 %517  ;;  %v598_v26 = vpop.permute.xlu0 %597  ;;  %v934_v62 = vld [vmem:[#allocation2 + $0x38] ss:$0 sm:$0xff] }
 0x153   :  { %v520_v45 = vsel %vm519_vm6, %v1329_v34, %v518_v2  ;;  %v523_v10 = vsel %vm519_vm6, %v518_v2, %v1314_v29  ;;  %v548_v29 = vmul.f32 %v1251_v13, %v540_v63  ;;  %v549_v31 = vmul.f32 %v1251_v13, %v541_v5 }
 0x154   :  { %v542_v30 = vmul.f32 %v535_v44, %v520_v45  ;;  %v543_v12 = vmul.f32 %v539_v42, %v523_v10 }
 0x156   :  { %v555_v9 = vpop.permute.xlu1 %554  ;;  %v602_v41 = vpop.permute.xlu0 %601 }
 0x157   :  { %v562_v47 = vsel %vm560_vm5, %v555_v9, %v557_v39  ;;  %v563_v56 = vsel %vm560_vm5, %v553_v8, %v555_v9  ;;  %v550_v9 = vmul.f32 %v1251_v13, %v542_v30 }
 0x158   :  { %v581_v57 = vmul.f32 %v568_v55, %v563_v56  ;;  %v582_v32 = vmul.f32 %v572_v1, %v562_v47  ;;  %v551_v47 = vmul.f32 %v1251_v13, %v543_v12 }
 0x15a   :  { %v559_v25 = vpop.permute.xlu1 %558  ;;  %v589_v43 = vmul.f32 %v1255_v24, %v581_v57  ;;  %v590_v28 = vmul.f32 %v1255_v24, %v582_v32 }
 0x15b   :  { %v561_v59 = vsel %vm560_vm5, %v557_v39, %v559_v25  ;;  %v564_v61 = vsel %vm560_vm5, %v559_v25, %v553_v8  ;;  %v652_v25 = vpop.permute.xlu0 %651 }
 0x15c   :  { %v583_v49 = vmul.f32 %v576_v53, %v561_v59  ;;  %v584_v27 = vmul.f32 %v580_v54, %v564_v61  ;;  %v593_v36 = vadd.f32 %v589_v43, %v548_v29  ;;  %v594_v39 = vadd.f32 %v590_v28, %v549_v31 }
 0x15e   :  { %v600_v8 = vpop.permute.xlu1 %599  ;;  %v591_v60 = vmul.f32 %v1255_v24, %v583_v49  ;;  %v592_v4 = vmul.f32 %v1255_v24, %v584_v27 }
 0x15f   :  { %v607_v50 = vsel %vm605_vm7, %v600_v8, %v602_v41  ;;  %v608_v34 = vsel %vm605_vm7, %v598_v26, %v600_v8 }
 0x160   :  { %v626_v0 = vmul.f32 %v931_v6, %v608_v34  ;;  %v627_v33 = vmul.f32 %v932_v11, %v607_v50  ;;  %v595_v53 = vadd.f32 %v591_v60, %v550_v9  ;;  %v596_v54 = vadd.f32 %v592_v4, %v551_v47 }
 0x162   :  { %v634_v2 = vmul.f32 %v1253_v3, %v626_v0  ;;  %v635_v55 = vmul.f32 %v1253_v3, %v627_v33  ;;  %v604_v1 = vpop.permute.xlu1 %603 }
 0x163   :  { %v606_v56 = vsel %vm605_vm7, %v602_v41, %v604_v1  ;;  %v609_v48 = vsel %vm605_vm7, %v604_v1, %v598_v26 }
 0x164   :  { %v638_v24 = vadd.f32 %v634_v2, %v593_v36  ;;  %v639_v51 = vadd.f32 %v635_v55, %v594_v39  ;;  %v628_v52 = vmul.f32 %v933_v38, %v606_v56  ;;  %v629_v58 = vmul.f32 %v934_v62, %v609_v48  ;;  %v722_v62 = vpop.permute.xlu0 %721 }
 0x166   :  { %v646_v44 = vadd.f32 %v1353_v35, %v638_v24  ;;  %v647_v57 = vadd.f32 %v1356_v37, %v639_v51  ;;  %v636_v32 = vmul.f32 %v1253_v3, %v628_v52  ;;  %v637_v13 = vmul.f32 %v1253_v3, %v629_v58 }
 0x168   :  { %v640_v42 = vadd.f32 %v636_v32, %v595_v53  ;;  %v641_v59 = vadd.f32 %v637_v13, %v596_v54  ;;  %v654_v61 = vadd.f32 %v652_v25, %v646_v44  ;;  %v655_v7 = vadd.f32 %v652_v25, %v647_v57 }
 0x16a   :  { %v648_v26 = vadd.f32 %v1361_v40, %v640_v42  ;;  %v649_v63 = vadd.f32 %v1363_v46, %v641_v59  ;;  %v658_v10 = vmax.f32 %v654_v61, 0.0  ;;  %v659_v49 = vmax.f32 %v655_v7, 0.0 }
 0x16c   :  { %v656_v5 = vadd.f32 %v652_v25, %v648_v26  ;;  %v657_v45 = vadd.f32 %v652_v25, %v649_v63  ;;  %v1432_v3 = vmin.f32 %v658_v10, 6.0  ;;  %v1434_v11 = vmin.f32 %v659_v49, 6.0 }
 0x16e   :  { %v660_v35 = vmax.f32 %v656_v5, 0.0  ;;  %v661_v27 = vmax.f32 %v657_v45, 0.0  ;;  %v731_v43 = vrot.slane %v1434_v11, %v1134_v18  ;;  %v727_v28 = vrot.slane %v1432_v3, %v1134_v18  ;;  %v806_v5 = vpop.permute.xlu0 %805 }
 0x16f   :  { %v675_v12 = vrot.slane %v1432_v3, %v1120_v14  ;;  %v679_v50 = vrot.slane %v1434_v11, %v1120_v14  ;;  %v699_v34 = vrot.slane %v1432_v3, %v1138_v20  ;;  %v703_v29 = vrot.slane %v1434_v11, %v1138_v20 }
 0x170   :  { %v1428_v37 = vmin.f32 %v660_v35, 6.0  ;;  %v1430_v6 = vmin.f32 %v661_v27, 6.0  ;;  %v740_v55 = vmul.f32 %v727_v28, %v722_v62  ;;  %v741_v1 = vmul.f32 %v731_v43, %v722_v62 }
 0x171   :  { %v759_v52 = vrot.slane %v1434_v11, %v1142_v22  ;;  %v815_v7 = vrot.slane %v1434_v11, %v1140_v21  ;;  %v783_v45 = vrot.slane %v1432_v3, %v1122_v15  ;;  %v787_v10 = vrot.slane %v1434_v11, %v1122_v15 }
 0x172   :  { %v683_v40 = vrot.slane %v1428_v37, %v1120_v14  ;;  %v687_v46 = vrot.slane %v1430_v6, %v1120_v14  ;;  %v735_v8 = vrot.slane %v1428_v37, %v1134_v18  ;;  %v739_v30 = vrot.slane %v1430_v6, %v1134_v18 }
 0x173   :  { %v670_v41 = vpop.permute.xlu1 %669  ;;  %v707_v31 = vrot.slane %v1428_v37, %v1138_v20  ;;  %v711_v0 = vrot.slane %v1430_v6, %v1138_v20  ;;  %v755_v20 = vrot.slane %v1432_v3, %v1142_v22  ;;  %v763_v58 = vrot.slane %v1428_v37, %v1142_v22 }
 0x174   :  { %v688_v33 = vmul.f32 %v675_v12, %v670_v41  ;;  %v689_v18 = vmul.f32 %v679_v50, %v670_v41  ;;  %v690_v60 = vmul.f32 %v683_v40, %v670_v41  ;;  %v691_v4 = vmul.f32 %v687_v46, %v670_v41 }
 0x175   :  { %v742_v9 = vmul.f32 %v735_v8, %v722_v62  ;;  %v743_v47 = vmul.f32 %v739_v30, %v722_v62  ;;  %v767_v53 = vrot.slane %v1430_v6, %v1142_v22  ;;  %v819_v26 = vrot.slane %v1428_v37, %v1140_v21 }
 0x176   :  { %v823_v63 = vrot.slane %v1430_v6, %v1140_v21  ;;  %v811_v22 = vrot.slane %v1432_v3, %v1140_v21  ;;  %v791_v49 = vrot.slane %v1428_v37, %v1122_v15  ;;  %v795_v35 = vrot.slane %v1430_v6, %v1122_v15 }
 0x177   :  { %v825_v50 = vmul.f32 %v815_v7, %v806_v5  ;;  %v839_v15 = vrot.slane %v1432_v3, %v1136_v19 }
 0x178   :  { %v694_v38 = vpop.permute.xlu1 %693  ;;  %v824_v12 = vmul.f32 %v811_v22, %v806_v5 }
 0x179   :  { %v712_v36 = vmul.f32 %v699_v34, %v694_v38  ;;  %v713_v14 = vmul.f32 %v703_v29, %v694_v38  ;;  %v714_v39 = vmul.f32 %v707_v31, %v694_v38  ;;  %v715_v2 = vmul.f32 %v711_v0, %v694_v38 }
 0x17a   :  { %v826_v34 = vmul.f32 %v819_v26, %v806_v5  ;;  %v827_v29 = vmul.f32 %v823_v63, %v806_v5  ;;  %v851_v38 = vrot.slane %v1430_v6, %v1136_v19 }
 0x17b   :  { %v716_v56 = vadd.f32 %v712_v36, %v688_v33  ;;  %v717_v48 = vadd.f32 %v713_v14, %v689_v18  ;;  %v718_v24 = vadd.f32 %v714_v39, %v690_v60  ;;  %v719_v51 = vadd.f32 %v715_v2, %v691_v4 }
 0x17c   :  { %v843_v60 = vrot.slane %v1434_v11, %v1136_v19  ;;  %v847_v4 = vrot.slane %v1428_v37, %v1136_v19  ;;  %v879_v19 = vrot.slane %v1430_v6, %v1144_v23 }
 0x17d   :  { %v750_v54 = vpop.permute.xlu1 %749  ;;  %v744_v44 = vadd.f32 %v740_v55, %v716_v56  ;;  %v745_v57 = vadd.f32 %v741_v1, %v717_v48  ;;  %v746_v32 = vadd.f32 %v742_v9, %v718_v24  ;;  %v747_v13 = vadd.f32 %v743_v47, %v719_v51 }
 0x17e   :  { %v768_v25 = vmul.f32 %v755_v20, %v750_v54  ;;  %v769_v42 = vmul.f32 %v759_v52, %v750_v54  ;;  %v770_v59 = vmul.f32 %v763_v58, %v750_v54  ;;  %v771_v61 = vmul.f32 %v767_v53, %v750_v54 }
 0x17f   :  { %v867_v56 = vrot.slane %v1432_v3, %v1144_v23  ;;  %v871_v48 = vrot.slane %v1434_v11, %v1144_v23  ;;  %v875_v24 = vrot.slane %v1428_v37, %v1144_v23  ;;  %v898_v3 = vcombine.high %v1127_v16, %v1127_v16 }
 0x180   :  { %v772_v27 = vadd.f32 %v768_v25, %v744_v44  ;;  %v773_v41 = vadd.f32 %v769_v42, %v745_v57  ;;  %v774_v40 = vadd.f32 %v770_v59, %v746_v32  ;;  %v775_v46 = vadd.f32 %v771_v61, %v747_v13  ;;  %v892_v13 = vpop.permute.xlu0 %891 }
 0x181   :  { %v899_v11 = vcombine.high %v1132_v17, %v1132_v17 }
 0x182   :  { %v778_v43 = vpop.permute.xlu1 %777 }
 0x183   :  { %v796_v28 = vmul.f32 %v783_v45, %v778_v43  ;;  %v797_v21 = vmul.f32 %v787_v10, %v778_v43  ;;  %v798_v8 = vmul.f32 %v791_v49, %v778_v43  ;;  %v799_v30 = vmul.f32 %v795_v35, %v778_v43 }
 0x185   :  { %v800_v31 = vadd.f32 %v796_v28, %v772_v27  ;;  %v801_v0 = vadd.f32 %v797_v21, %v773_v41  ;;  %v802_v33 = vadd.f32 %v798_v8, %v774_v40  ;;  %v803_v18 = vadd.f32 %v799_v30, %v775_v46 }
 0x187   :  { %v834_v62 = vpop.permute.xlu1 %833  ;;  %v829_v36 = vadd.f32 %v825_v50, %v801_v0  ;;  %v830_v14 = vadd.f32 %v826_v34, %v802_v33  ;;  %v831_v39 = vadd.f32 %v827_v29, %v803_v18  ;;  %v828_v2 = vadd.f32 %v824_v12, %v800_v31 }
 0x188   :  { %v852_v55 = vmul.f32 %v839_v15, %v834_v62  ;;  %v853_v1 = vmul.f32 %v843_v60, %v834_v62  ;;  %v854_v9 = vmul.f32 %v847_v4, %v834_v62  ;;  %v855_v47 = vmul.f32 %v851_v38, %v834_v62 }
 0x18a   :  { %v857_v20 = vadd.f32 %v853_v1, %v829_v36  ;;  %v858_v52 = vadd.f32 %v854_v9, %v830_v14  ;;  %v859_v58 = vadd.f32 %v855_v47, %v831_v39  ;;  %v856_v53 = vadd.f32 %v852_v55, %v828_v2 }
 0x18c   :  { %v862_v51 = vpop.permute.xlu1 %861 }
 0x18d   :  { %v880_v54 = vmul.f32 %v867_v56, %v862_v51  ;;  %v881_v44 = vmul.f32 %v871_v48, %v862_v51  ;;  %v882_v57 = vmul.f32 %v875_v24, %v862_v51  ;;  %v883_v32 = vmul.f32 %v879_v19, %v862_v51 }
 0x18f   :  { %v885_v37 = vadd.f32 %v881_v44, %v857_v20  ;;  %v886_v25 = vadd.f32 %v882_v57, %v858_v52  ;;  %v887_v42 = vadd.f32 %v883_v32, %v859_v58  ;;  %v884_v23 = vadd.f32 %v880_v54, %v856_v53 }
 0x191   :  { %v894_v6 = vadd.f32 %v892_v13, %v884_v23  ;;  %v895_v59 = vadd.f32 %v892_v13, %v885_v37  ;;  %v896_v61 = vadd.f32 %v892_v13, %v886_v25  ;;  %v897_v7 = vadd.f32 %v892_v13, %v887_v42 }
 0x193   :  { %v902_v26 = vadd.f32 %v894_v6, %v1127_v16  ;;  %v903_v63 = vadd.f32 %v898_v3, %v895_v59  ;;  %v904_v22 = vadd.f32 %v896_v61, %v1132_v17  ;;  %v905_v5 = vadd.f32 %v899_v11, %v897_v7 }
 0x195   :  { %v910_v45 = vcombine.low %v902_v26, %v903_v63  ;;  %v911_v10 = vcombine.low %v904_v22, %v905_v5 }
 0x197   :  { %914 = vst [vmem:[#allocation5] sm:$0xff] %v910_v45  ;;  %915 = vst [vmem:[#allocation5 + $0x8] sm:$0xff] %v911_v10 }
 0x198   :  { %1014 = shalt.err (!%p1011_p12)
}
 0x199   :  { %s1015_s8 = scalar_lea.hbm %s1524_s6, 256 }
 0x19a   :  { %p1016_p13 = scmp.ne.s32.totalorder %s1524_s6, %s1015_s8  ;;  %p1019_p0 = scmp.lt.u32.totalorder %s1015_s8, %s1524_s6 }
 0x19c   :  { %p1021_p1 = pnand %p1019_p0, %p1016_p13 }
 0x19e   :  { %1024 = shalt.err (!%p1021_p1)
}
 0x19f   :  { %925 = dma.vmem_to_hbm [thread:$0]  %s923_s4, 256, %s1524_s6, [#allocation4]  }
 0x1a0   :  { %1027 = dma.done.wait [#allocation4], 256  }
 0x1a1   :  { %1028 = vsyncadd [#allocation4], 4294967040 }
 0x1a2   :  { %929 = vsyncpa [#allocation3], 1 }
 0x1a3   :  { %930 = vsyncpa [#allocation4], 1 }

</bundles_post_ra>
